<compile_context>
chip_gen: v5e
topology: v5e:2x2
jax: 0.10.0
libtpu: 0.0.40
codegen_flags: <defaults>
</compile_context>

<pallas_src>
import jax
import jax.numpy as jnp
from jax.experimental import pallas as pl
from jax.experimental.pallas import tpu as pltpu


def _round_up(x, m):
    return (x + m - 1) // m * m


def _cdiv(a, b):
    return -(-a // b)


def _embed_onehot_kernel(ids_ref, table_ref, out_ref):
    """One grid step embeds a tile of T tokens.

    ids_ref:   (1, T, 1) int32  token ids for this tile (column layout)
    table_ref: (V, D)    f32    full embedding table, VMEM resident
    out_ref:   (T, D)    f32    gathered embedding rows
    """
    ids_col = ids_ref[0]                               # (T, 1) int32
    T = out_ref.shape[0]
    V = table_ref.shape[0]
    # One-hot selector on the VPU; the gather becomes a (T,V)x(V,D) MXU matmul.
    vocab_iota = jax.lax.broadcasted_iota(jnp.int32, (T, V), 1)
    one_hot = (ids_col == vocab_iota).astype(table_ref.dtype)
    out_ref[...] = jnp.dot(
        one_hot, table_ref[...], preferred_element_type=jnp.float32
    ).astype(out_ref.dtype)
    # Dropout with p = 0.0 is the identity -> nothing else to do.
    # TODO(synk): training-mode dropout (p > 0) would need a stochastic keep
    # mask via pltpu.prng_seed / pltpu.prng_random_bits; this matches eval/p=0.


def word_embedding_forward(
    token_ids,
    emb_table,
    *,
    block_tokens=2048,        # raised from 256 per perf review (overhead-bound)
    core_parallel=False,      # set True on v7x to split the grid across both TCs
    vmem_budget_bytes=24 << 20,
):
    """token_ids: (B, S) int; emb_table: (ntoken+1, D) f32 -> (B, S, D) f32."""
    B, S = token_ids.shape
    V, D = emb_table.shape
    n = B * S
    lane = 128

    # ---- Tile-size selection: T is always a multiple of 8 (hard (8,128) rule),
    #      capped by block_tokens and by the VMEM footprint gate. ----
    T_cap = _round_up(max(1, min(block_tokens, n)), 8)

    def _footprint(t):
        # Double-buffered ids block is lane-padded to 128 (accepted waste: still
        # small at T=2048; see review item 8), double-buffered (T,D) output,
        # one (T, V->128) f32 one-hot intermediate, double-buffered table.
        ids_b = 2 * t * lane * 4
        out_b = 2 * t * D * 4
        onehot_b = t * _round_up(V, lane) * 4
        table_b = 2 * _round_up(V, 8) * _round_up(D, lane) * 4
        return ids_b + out_b + onehot_b + table_b

    while T_cap > 8 and _footprint(T_cap) > vmem_budget_bytes:
        T_cap = _round_up(T_cap // 2, 8)
    if _footprint(T_cap) > vmem_budget_bytes:
        # TODO(synk): for very large vocabularies (V*D beyond the VMEM budget),
        # add a vocab grid axis with an f32 accumulator (P3) or a scalar-prefetch
        # row-gather BlockSpec instead of the resident-table one-hot design.
        raise NotImplementedError(
            "Embedding table too large for the VMEM-resident one-hot design.")

    # Split tokens evenly across blocks so padded tail writes are minimal.
    n_blocks = _cdiv(n, T_cap)
    T = _round_up(_cdiv(n, n_blocks), 8)
    n_pad = n_blocks * T

    pad_id = V - 1  # zero padding row; padded tail rows are sliced off anyway
    flat_ids = token_ids.reshape(-1).astype(jnp.int32)
    flat_ids = jnp.pad(flat_ids, (0, n_pad - n), constant_values=pad_id)
    # (n_blocks, T, 1): ids arrive already in "column" layout so the kernel
    # never has to transpose them before the one-hot comparison.
    ids3d = flat_ids.reshape(n_blocks, T, 1)

    grid_spec = pltpu.PrefetchScalarGridSpec(
        num_scalar_prefetch=0,
        grid=(n_blocks,),
        in_specs=[
            # Token-id tile for this step.
            pl.BlockSpec((1, T, 1), lambda i: (i, 0, 0)),
            # Full table, same block every step -> fetched once, VMEM resident.
            pl.BlockSpec((V, D), lambda i: (0, 0)),
        ],
        out_specs=pl.BlockSpec((T, D), lambda i: (i, 0)),
    )

    if core_parallel:
        # v7x only: actually shard the (independent) token axis across both TCs.
        dim_sem = (pltpu.CORE_PARALLEL,)
    else:
        dim_sem = ("parallel",)

    cost = pl.CostEstimate(
        flops=2 * n_pad * V * D,
        transcendentals=0,
        bytes_accessed=n_pad * D * 4 + n_pad * 4 + V * D * 4,
    )

    out_flat = pl.pallas_call(
        _embed_onehot_kernel,
        grid_spec=grid_spec,
        out_shape=jax.ShapeDtypeStruct((n_pad, D), emb_table.dtype),
        compiler_params=pltpu.CompilerParams(dimension_semantics=dim_sem),
        cost_estimate=cost,
    )(ids3d, emb_table)

    return out_flat[:n].reshape(B, S, D)


def make_embedding_table(key, ntoken, dim):
    """Deterministic init matching nn.Embedding(ntoken+1, dim, padding_idx=ntoken):
    N(0,1) rows for real tokens, zero row at index `ntoken`."""
    weights = jax.random.normal(key, (ntoken, dim), dtype=jnp.float32)
    pad_row = jnp.zeros((1, dim), dtype=jnp.float32)
    return jnp.concatenate([weights, pad_row], axis=0)


if __name__ == "__main__":
    ntoken, dim = 48, 128   # small vocab; dim = 128 keeps the last dim lane-aligned
    key = jax.random.PRNGKey(0)
    k_w, k_x1, k_x2, k_x3 = jax.random.split(key, 4)

    emb_table = make_embedding_table(k_w, ntoken, dim)

    # Case 1: canonical small case (single tile); includes the padding id.
    B, S = 2, 8
    token_ids = jax.random.randint(k_x1, (B, S), 0, ntoken + 1, dtype=jnp.int32)
    out = jax.block_until_ready(word_embedding_forward(token_ids, emb_table))
    ref = emb_table[token_ids]
    assert out.shape == (B, S, dim)
    assert out.dtype == jnp.float32
    assert jnp.allclose(out, ref), "mismatch vs reference (single tile)"

    # Case 2: multi-tile with non-multiple-of-8 caller hint (T forced 8-aligned).
    B2, S2 = 3, 100
    token_ids2 = jax.random.randint(k_x2, (B2, S2), 0, ntoken + 1, dtype=jnp.int32)
    out2 = jax.block_until_ready(
        word_embedding_forward(token_ids2, emb_table, block_tokens=100))
    assert jnp.allclose(out2, emb_table[token_ids2]), "mismatch (multi-tile)"

    # Case 3: larger token count exercising the big default tile / even split.
    B3, S3 = 8, 300
    token_ids3 = jax.random.randint(k_x3, (B3, S3), 0, ntoken + 1, dtype=jnp.int32)
    out3 = jax.block_until_ready(word_embedding_forward(token_ids3, emb_table))
    assert jnp.allclose(out3, emb_table[token_ids3]), "mismatch (large tile)"

    print("KERNEL_OK")
</pallas_src>

<mosaic_0001>
module attributes {stable_mosaic.version = 11 : i64} {
  func.func @_embed_onehot_kernel(%arg0: i32, %arg1: memref<1x16x1xi32, #tpu.memory_space<vmem>>, %arg2: memref<49x128xf32, #tpu.memory_space<vmem>>, %arg3: memref<16x128xf32, #tpu.memory_space<vmem>>) attributes {dimension_semantics = [#tpu.dimension_semantics<parallel>], iteration_bounds = array<i64: 1>, scalar_prefetch = 0 : i64, scratch_operands = 0 : i64, tpu.core_type = #tpu.core_type<tc>, window_params = [{transform_indices = @transform_0, window_bounds = array<i64: 1, 16, 1>}, {pipeline_mode = #tpu.pipeline_mode<synchronous>, transform_indices = @transform_1, window_bounds = array<i64: 49, 128>}, {transform_indices = @transform_2, window_bounds = array<i64: 16, 128>}]} {
    %c0 = arith.constant 0 : index
    %c0_0 = arith.constant 0 : index
    %c0_1 = arith.constant 0 : index
    %0 = vector.load %arg1[%c0, %c0_0, %c0_1] : memref<1x16x1xi32, #tpu.memory_space<vmem>>, vector<1x16x1xi32>
    %1 = vector.shape_cast %0 : vector<1x16x1xi32> to vector<16x1xi32>
    %2 = tpu.iota {dimensions = array<i32: 1>} : vector<16x49xi32>
    %3 = vector.broadcast %1 : vector<16x1xi32> to vector<16x49xi32>
    %4 = arith.cmpi eq, %3, %2 : vector<16x49xi32>
    %5 = arith.extui %4 : vector<16x49xi1> to vector<16x49xi32>
    %6 = arith.sitofp %5 : vector<16x49xi32> to vector<16x49xf32>
    %c0_2 = arith.constant 0 : index
    %c0_3 = arith.constant 0 : index
    %7 = vector.load %arg2[%c0_2, %c0_3] : memref<49x128xf32, #tpu.memory_space<vmem>>, vector<49x128xf32>
    %cst = arith.constant dense<0.000000e+00> : vector<16x128xf32>
    %8 = tpu.matmul %6, %7, %cst {dimension_numbers = #tpu.dot_dimension_numbers<[1], [0], [0], [1], [0, 0, 1, 1], [], []>} : vector<16x49xf32>, vector<49x128xf32>, vector<16x128xf32> -> vector<16x128xf32>
    %c0_4 = arith.constant 0 : index
    %c0_5 = arith.constant 0 : index
    %9 = vector.load %arg3[%c0_4, %c0_5] : memref<16x128xf32, #tpu.memory_space<vmem>>, vector<16x128xf32>
    tpu.vector_store %arg3[%c0_4, %c0_5], %8 {strides = array<i32>} : memref<16x128xf32, #tpu.memory_space<vmem>>, vector<16x128xf32>,
    return
  }
  func.func @transform_0(%arg0: i32) -> (i32, i32, i32) {
    %c0_i32 = arith.constant 0 : i32
    %c0_i32_0 = arith.constant 0 : i32
    %c0_i32_1 = arith.constant 0 : i32
    return %arg0, %c0_i32, %c0_i32_0 : i32, i32, i32
  }
  func.func @transform_1(%arg0: i32) -> (i32, i32) {
    %c0_i32 = arith.constant 0 : i32
    %c0_i32_0 = arith.constant 0 : i32
    %c0_i32_1 = arith.constant 0 : i32
    return %c0_i32, %c0_i32_0 : i32, i32
  }
  func.func @transform_2(%arg0: i32) -> (i32, i32) {
    %c0_i32 = arith.constant 0 : i32
    %c0_i32_0 = arith.constant 0 : i32
    return %arg0, %c0_i32 : i32, i32
  }
}

</mosaic_0001>

<bundles_post_ra>
// kernel: tpu_custom_call.1
= control target key start
LH: loop header
LB: loop body
LE: loop exit
PB: predicated region body
PF: predicated region fallthrough
CT: control target
= control target key end

     0   :  { %7 = vsyncpa [#allocation3], 0  ;;  %s216_s0 = inlined_call_operand.vmem [shape: s32[1,16,1], index: 0, kind: input, shape index: {}]   ;;  %s217_s1 = inlined_call_operand.hbm [shape: f32[49,128], index: 1, kind: input, shape index: {}]   ;;  %s218_s2 = inlined_call_operand.hbm [shape: f32[16,128], index: 2, kind: output, shape index: {}]  }
   0x1   :  { %8 = vsyncpa [#allocation4], 0  ;;  %s15_s11 = sshll.u32 %s217_s1, 4  ;;  %s177_s12 = smov [#allocation2]   ;;  %s16_s11 = int_to_ptr.hbm [resolvable:$true] %s15_s11 }
   0x2   :  { %s17_s13 = sshll.u32 %s177_s12, 4  ;;  %s178_s14 = smov 128   ;;  %s18_s13 = int_to_ptr.vmem [resolvable:$true] %s17_s13 }
   0x3   :  { %s179_s15 = smov 8  }
   0x4   :  { %23 = dma.hbm_to_vmem [thread:$0]  %s16_s11, 896, %s18_s13, [#allocation3], %s178_s14, %s178_s14, %s179_s15  }
   0x5   :  { %173 = dma.done.wait [#allocation3], 896  }
   0x6   :  { %174 = vsyncadd [#allocation3], 4294966400  ;;  %v180_v0 = vmov 0   ;;  %vm58_vm0 = vcmask 1040384   ;;  %v28_v1 = vld [vmem:[%s216_s0] sm:$0xff]  ;;  %v49_v3 = vld [vmem:[#allocation2 + $0x28] sm:$0xff]  ;;  %v30_v10 = vlaneseq }
   0x7   :  { %124 = vset.pattern.permute.xlu0 %v180_v0  ;;  %v50_v2 = vld [vmem:[#allocation2 + $0x30] sm:$0x1]  ;;  %v48_v4 = vld [vmem:[#allocation2 + $0x20] sm:$0xff]  ;;  %v47_v5 = vld [vmem:[#allocation2 + $0x18] sm:$0xff]  ;;  %vm51_vm1 = vcmask 400384   ;;  %v181_v13 = vmov 0.0  }
   0x8   :  { %33 = vperm.xlu0 %124, %v28_v1   ;;  %108 = vmatpush.msk.msra.mxu0 %vm58_vm0, %v50_v2  ;;  %v29_v6 = vld [vmem:[%s216_s0 + $0x8] sm:$0xff]  ;;  %v46_v7 = vld [vmem:[#allocation2 + $0x10] sm:$0xff]  ;;  %v44_v9 = vld [vmem:[#allocation2] sm:$0xff]  ;;  %v31_v11 = vand.u32 127, %v30_v10  ;;  %s182_s0 = smov [#allocation5]   ;;  %s93_s22 = sshll.u32 %s218_s2, 4  ;;  %s94_s22 = int_to_ptr.hbm [resolvable:$true] %s93_s22 }
   0x9   :  { %111 = vmatpush.msk.msra.mxu1 %vm58_vm0, %v50_v2  ;;  %v45_v8 = vld [vmem:[#allocation2 + $0x8] sm:$0xff]  ;;  %s91_s19 = sshll.u32 %s182_s0, 4  ;;  %s92_s19 = int_to_ptr.vmem [resolvable:$true] %s91_s19 }
   0xa   :  { %72 = vmatpush.msra.mxu0 %v49_v3 }
   0xb   :  { %112 = vmatpush.msra.mxu1 %v49_v3 }
   0xc   :  { %73 = vmatpush.msra.mxu0 %v48_v4 }
   0xd   :  { %113 = vmatpush.msra.mxu1 %v48_v4 }
   0xe   :  { %74 = vmatpush.msra.mxu0 %v47_v5 }
   0xf   :  { %114 = vmatpush.msra.mxu1 %v47_v5 }
  0x10   :  { %36 = vperm.xlu0 %124, %v29_v6   ;;  %75 = vmatpush.msra.mxu0 %v46_v7 }
  0x11   :  { %115 = vmatpush.msra.mxu1 %v46_v7 }
  0x12   :  { %76 = vmatpush.msra.mxu0 %v45_v8 }
  0x13   :  { %116 = vmatpush.msra.mxu1 %v45_v8 }
  0x14   :  { %77 = vmatpush.msra.mxu0 %v44_v9 }
  0x15   :  { %117 = vmatpush.msra.mxu1 %v44_v9 }
  0x7a   :  { %v34_v12 = vpop.permute.xlu0 %33 }
  0x7b   :  { %vm38_vm2 = vcmp.eq.s32.totalorder %v34_v12, %v31_v11 }
  0x7c   :  { %v106_v14 = vsel %vm38_vm2, 1.0, %v181_v13 }
  0x7d   :  { %109 = vmatmul.msk.f32.vlgmr.msra.gmra.mxu0 %vm51_vm1, %v106_v14 }
  0x82   :  { %v37_v15 = vpop.permute.xlu0 %36 }
  0x83   :  { %vm39_vm3 = vcmp.eq.s32.totalorder %v37_v15, %v31_v11 }
  0x84   :  { %v107_v16 = vsel %vm39_vm3, 1.0, %v181_v13 }
  0x85   :  { %110 = vmatmul.msk.f32.vlgmr.msra.gmra.mxu1 %vm51_vm1, %v107_v16 }
  0xfa   :  { %v79_v17 = vpop.f32.mrf.mxu0 }
  0xfb   :  { %85 = vst [vmem:[#allocation5] sm:$0xff] %v79_v17 }
 0x102   :  { %v82_v18 = vpop.f32.mrf.mxu1 }
 0x103   :  { %86 = vst [vmem:[#allocation5 + $0x8] sm:$0xff] %v82_v18 }
 0x104   :  { %99 = dma.vmem_to_hbm [thread:$0]  %s92_s19, 256, %s94_s22, [#allocation4], %s178_s14, %s178_s14, %s179_s15  }
 0x105   :  { %175 = dma.done.wait [#allocation4], 256  }
 0x106   :  { %176 = vsyncadd [#allocation4], 4294967040 }
 0x107   :  { %104 = vsyncpa [#allocation3], 1 }
 0x108   :  { %105 = vsyncpa [#allocation4], 1 }

</bundles_post_ra>
